<compile_context>
chip_gen: v7x
topology: tpu7x:2x2x1
jax: 0.10.0
libtpu: 0.0.40
codegen_flags: <defaults>
</compile_context>

<pallas_src>
import functools

import jax
import jax.numpy as jnp
from jax.experimental import pallas as pl
from jax.experimental.pallas import tpu as pltpu

LANE = 128
SUBLANE_BF16 = 16  # sublane packing of the bf16 output tile


def _round_up(n, m):
    return ((n + m - 1) // m) * m


def _cdiv(a, b):
    return -(-a // b)


# ------------------------------------------------------------------ fused MLP kernel
def mlp_kernel(x_ref, w12_ref, b12_ref, w3_ref, b3_ref, o_ref):
    """One batch tile of the fused 3-layer MLP.

    x_ref   : (TM, In)     f32   activation tile (cast to bf16 in-kernel)
    w12_ref : (2, Dk, Dk)  bf16  packed, zero-padded fc1/fc2 weights (VMEM-resident)
    b12_ref : (2, Dk)      f32   packed fc1/fc2 biases
    w3_ref  : (Dk, Do)     bf16  zero-padded fc3 weight
    b3_ref  : (1, Do)      f32   fc3 bias
    o_ref   : (TM, Do)     bf16  lane-dense output tile
    """
    in_features = x_ref.shape[1]

    x = x_ref[...].astype(jnp.bfloat16)                     # in-kernel cast, no wrapper pass

    # fc1 + Sigmoid          (Dropout(0.5) -> identity in inference mode)
    w1 = w12_ref[0, :in_features, :]                        # static aligned slice: K = In
    h1 = jnp.dot(x, w1, preferred_element_type=jnp.float32) + b12_ref[0:1, :]
    h1 = jax.nn.sigmoid(h1)                                 # f32 elementwise (v5e: no bf16 VPU/EUP)

    # fc2 + ReLU             (Dropout(0.5) -> identity in inference mode)
    h2 = jnp.dot(h1.astype(jnp.bfloat16), w12_ref[1],
                 preferred_element_type=jnp.float32) + b12_ref[1:2, :]
    h2 = jnp.maximum(h2, 0.0)

    # fc3
    out = jnp.dot(h2.astype(jnp.bfloat16), w3_ref[...],
                  preferred_element_type=jnp.float32) + b3_ref[...]
    o_ref[...] = out.astype(o_ref.dtype)                    # bf16 writeback


# --------------------------------------------------------------- one-time param packing
def prepare_params(params):
    """One-time packing (run OUTSIDE the per-call forward): pads/packs the 6 parameter
    tensors into 4 lane-aligned buffers and casts the weights to bf16 MXU operands.
    Weights are stored [in_features, out_features] (transposed vs. PyTorch)."""
    In, H = params["w1"].shape
    O = params["w3"].shape[1]
    Dk = _round_up(max(In, H), LANE)   # contraction / hidden width
    Do = _round_up(O, LANE)            # output width (decoupled from Dk)

    w12 = jnp.zeros((2, Dk, Dk), jnp.float32)
    w12 = w12.at[0, :In, :H].set(params["w1"])
    w12 = w12.at[1, :H, :H].set(params["w2"])
    b12 = jnp.zeros((2, Dk), jnp.float32)
    b12 = b12.at[0, :H].set(params["b1"].reshape(-1))
    b12 = b12.at[1, :H].set(params["b2"].reshape(-1))
    w3 = jnp.zeros((Dk, Do), jnp.float32).at[:H, :O].set(params["w3"])
    b3 = jnp.zeros((1, Do), jnp.float32).at[0, :O].set(params["b3"].reshape(-1))

    return {
        "w12": w12.astype(jnp.bfloat16),
        "b12": b12,
        "w3": w3.astype(jnp.bfloat16),
        "b3": b3,
        "out_features": O,
    }


# ---------------------------------------------------------------------------- forward
@functools.partial(jax.jit, static_argnames=("out_features", "tm"))
def _forward(x, w12, b12, w3, b3, *, out_features, tm):
    B, In = x.shape
    Dk = w12.shape[-1]
    Do = w3.shape[-1]

    # Divisor-aware batch tile: minimize phantom padded rows while keeping the bf16
    # output tile sublane-aligned.
    n_steps = max(1, _cdiv(B, tm))
    tm_eff = _round_up(_cdiv(B, n_steps), SUBLANE_BF16)
    B_pad = _round_up(B, tm_eff)
    if B_pad != B:
        x = jnp.pad(x, ((0, B_pad - B), (0, 0)))  # rows-only pad of [pad, In] f32 (tiny)

    grid = (B_pad // tm_eff,)

    # TODO(synk): at production widths (H >= 4096) the resident [2, Dk, Dk] weight buffer
    # exceeds v7x's 64 MiB VMEM -- switch to K/N-tiled weights (reduction grid axis marked
    # "arbitrary" or emit_pipeline), budget <= ~24 MiB resident on v7x, and raise
    # vmem_limit_bytes explicitly when keeping them resident on v6e/v5e.
    # TODO(synk): constant-index weight/bias blocks may still be double-buffered by the
    # default pipeline; single-buffer them (pl.Buffered(1) / verify the Mosaic VMEM
    # report) before scaling H.
    out_pad = pl.pallas_call(
        mlp_kernel,
        out_shape=jax.ShapeDtypeStruct((B_pad, Do), jnp.bfloat16),
        grid=grid,
        in_specs=[
            # unpadded activation tile: last dim == full array dim, so (tm_eff, In) is legal
            pl.BlockSpec((tm_eff, In), lambda i: (i, 0)),
            # parameters: constant index_map -> fetched once, VMEM-resident across steps
            pl.BlockSpec((2, Dk, Dk), lambda i: (0, 0, 0)),
            pl.BlockSpec((2, Dk), lambda i: (0, 0)),
            pl.BlockSpec((Dk, Do), lambda i: (0, 0)),
            pl.BlockSpec((1, Do), lambda i: (0, 0)),
        ],
        # lane-dense bf16 output tile (last dim = Do, a multiple of 128)
        out_specs=pl.BlockSpec((tm_eff, Do), lambda i: (i, 0)),
        compiler_params=pltpu.CompilerParams(
            dimension_semantics=("parallel",),  # v7x: shard batch tiles across its 2 TCs
        ),
    )(x, w12, b12, w3, b3)

    return out_pad[:B, :out_features]


def classification_net_forward(x, packed, *, tm=256):
    """x: [B, input_size] f32; packed: output of prepare_params(). Returns bf16 [B, O].
    Note: MXU operands are rounded to bf16 (f32 accumulation) and the output is bf16 --
    a deliberate deviation from PyTorch's f32 nn.Linear (~1e-3-level drift)."""
    return _forward(x, packed["w12"], packed["b12"], packed["w3"], packed["b3"],
                    out_features=packed["out_features"], tm=tm)


# ------------------------------------------------------------------------------- init
def init_params(key, input_size, hidden_size, output_size):
    """Deterministic init mimicking nn.Linear's uniform(-1/sqrt(fan_in), 1/sqrt(fan_in)).
    Weights stored as [in_features, out_features] (transposed vs. PyTorch)."""
    ks = jax.random.split(key, 6)

    def lin(kw, kb, fan_in, fan_out):
        bound = 1.0 / jnp.sqrt(fan_in)
        w = jax.random.uniform(kw, (fan_in, fan_out), jnp.float32, -bound, bound)
        b = jax.random.uniform(kb, (1, fan_out), jnp.float32, -bound, bound)
        return w, b

    w1, b1 = lin(ks[0], ks[1], input_size, hidden_size)
    w2, b2 = lin(ks[2], ks[3], hidden_size, hidden_size)
    w3, b3 = lin(ks[4], ks[5], hidden_size, output_size)
    return {"w1": w1, "b1": b1, "w2": w2, "b2": b2, "w3": w3, "b3": b3}


if __name__ == "__main__":
    input_size, hidden_size, output_size = 32, 32, 8
    batch = 512

    key = jax.random.PRNGKey(0)
    k_x, k_p = jax.random.split(key)
    x = jax.random.normal(k_x, (batch, input_size), jnp.float32)
    params = init_params(k_p, input_size, hidden_size, output_size)

    # One-time packing, hoisted out of the per-call forward.
    packed = prepare_params(params)

    # tm=128 -> 4 grid steps: >= 2 steps per TensorCore on v7x so the per-TC pipeline can
    # overlap input/output DMAs with compute (sweep tm upward on v6e for large batches).
    out = classification_net_forward(x, packed, tm=128)
    jax.block_until_ready(out)
    assert out.shape == (batch, output_size)
    assert out.dtype == jnp.bfloat16

    # Reference in plain JAX with the same bf16-operand / f32-accumulate matmuls and
    # bf16 final cast as the kernel (dropout = identity in eval mode).
    # TODO(synk): training-mode Dropout would need pltpu.prng_seed/prng_random_bits masking.
    def dot_bf16(a, b):
        return jnp.dot(a.astype(jnp.bfloat16), b.astype(jnp.bfloat16),
                       preferred_element_type=jnp.float32)

    h1 = jax.nn.sigmoid(dot_bf16(x, params["w1"]) + params["b1"])
    h2 = jnp.maximum(dot_bf16(h1, params["w2"]) + params["b2"], 0.0)
    ref = (dot_bf16(h2, params["w3"]) + params["b3"]).astype(jnp.bfloat16)

    assert jnp.allclose(out.astype(jnp.float32), ref.astype(jnp.float32),
                        atol=2e-2, rtol=2e-2), "mismatch vs reference"

    print("KERNEL_OK")
</pallas_src>

<mosaic_0001>
module attributes {stable_mosaic.version = 11 : i64} {
  func.func @mlp_kernel(%arg0: i32, %arg1: memref<128x32xf32, #tpu.memory_space<vmem>>, %arg2: memref<2x128x128xbf16, #tpu.memory_space<vmem>>, %arg3: memref<2x128xf32, #tpu.memory_space<vmem>>, %arg4: memref<128x128xbf16, #tpu.memory_space<vmem>>, %arg5: memref<1x128xf32, #tpu.memory_space<vmem>>, %arg6: memref<128x128xbf16, #tpu.memory_space<vmem>>) attributes {dimension_semantics = [#tpu.dimension_semantics<parallel>], iteration_bounds = array<i64: 4>, scalar_prefetch = 0 : i64, scratch_operands = 0 : i64, tpu.core_type = #tpu.core_type<tc>, window_params = [{transform_indices = @transform_0, window_bounds = array<i64: 128, 32>}, {pipeline_mode = #tpu.pipeline_mode<synchronous>, transform_indices = @transform_1, window_bounds = array<i64: 2, 128, 128>}, {pipeline_mode = #tpu.pipeline_mode<synchronous>, transform_indices = @transform_2, window_bounds = array<i64: 2, 128>}, {pipeline_mode = #tpu.pipeline_mode<synchronous>, transform_indices = @transform_3, window_bounds = array<i64: 128, 128>}, {pipeline_mode = #tpu.pipeline_mode<synchronous>, transform_indices = @transform_4, window_bounds = array<i64: 1, 128>}, {transform_indices = @transform_5, window_bounds = array<i64: 128, 128>}]} {
    %c0 = arith.constant 0 : index
    %c0_0 = arith.constant 0 : index
    %0 = vector.load %arg1[%c0, %c0_0] : memref<128x32xf32, #tpu.memory_space<vmem>>, vector<128x32xf32>
    %1 = arith.truncf %0 : vector<128x32xf32> to vector<128x32xbf16>
    %c0_1 = arith.constant 0 : index
    %c0_2 = arith.constant 0 : index
    %c0_3 = arith.constant 0 : index
    %2 = vector.load %arg2[%c0_1, %c0_2, %c0_3] : memref<2x128x128xbf16, #tpu.memory_space<vmem>>, vector<1x32x128xbf16>
    %3 = vector.shape_cast %2 : vector<1x32x128xbf16> to vector<32x128xbf16>
    %cst = arith.constant dense<0.000000e+00> : vector<128x128xf32>
    %4 = tpu.matmul %1, %3, %cst {dimension_numbers = #tpu.dot_dimension_numbers<[1], [0], [0], [1], [0, 0, 1, 1], [], []>} : vector<128x32xbf16>, vector<32x128xbf16>, vector<128x128xf32> -> vector<128x128xf32>
    %c0_4 = arith.constant 0 : index
    %c0_5 = arith.constant 0 : index
    %5 = vector.load %arg3[%c0_4, %c0_5] : memref<2x128xf32, #tpu.memory_space<vmem>>, vector<1x128xf32>
    %6 = vector.broadcast %5 : vector<1x128xf32> to vector<128x128xf32>
    %7 = arith.addf %4, %6 : vector<128x128xf32>
    %8 = arith.negf %7 : vector<128x128xf32>
    %9 = math.exp %8 : vector<128x128xf32>
    %cst_6 = arith.constant 1.000000e+00 : f32
    %10 = vector.broadcast %cst_6 : f32 to vector<128x128xf32>
    %11 = arith.addf %10, %9 : vector<128x128xf32>
    %12 = arith.divf %10, %11 : vector<128x128xf32>
    %13 = arith.truncf %12 : vector<128x128xf32> to vector<128x128xbf16>
    %c1 = arith.constant 1 : index
    %c0_7 = arith.constant 0 : index
    %c0_8 = arith.constant 0 : index
    %14 = vector.load %arg2[%c1, %c0_7, %c0_8] : memref<2x128x128xbf16, #tpu.memory_space<vmem>>, vector<1x128x128xbf16>
    %15 = vector.shape_cast %14 : vector<1x128x128xbf16> to vector<128x128xbf16>
    %cst_9 = arith.constant dense<0.000000e+00> : vector<128x128xf32>
    %16 = tpu.matmul %13, %15, %cst_9 {dimension_numbers = #tpu.dot_dimension_numbers<[1], [0], [0], [1], [0, 0, 1, 1], [], []>} : vector<128x128xbf16>, vector<128x128xbf16>, vector<128x128xf32> -> vector<128x128xf32>
    %c1_10 = arith.constant 1 : index
    %c0_11 = arith.constant 0 : index
    %17 = vector.load %arg3[%c1_10, %c0_11] : memref<2x128xf32, #tpu.memory_space<vmem>>, vector<1x128xf32>
    %18 = vector.broadcast %17 : vector<1x128xf32> to vector<128x128xf32>
    %19 = arith.addf %16, %18 : vector<128x128xf32>
    %cst_12 = arith.constant 0.000000e+00 : f32
    %20 = vector.broadcast %cst_12 : f32 to vector<128x128xf32>
    %21 = arith.maximumf %19, %20 : vector<128x128xf32>
    %22 = arith.truncf %21 : vector<128x128xf32> to vector<128x128xbf16>
    %c0_13 = arith.constant 0 : index
    %c0_14 = arith.constant 0 : index
    %23 = vector.load %arg4[%c0_13, %c0_14] : memref<128x128xbf16, #tpu.memory_space<vmem>>, vector<128x128xbf16>
    %cst_15 = arith.constant dense<0.000000e+00> : vector<128x128xf32>
    %24 = tpu.matmul %22, %23, %cst_15 {dimension_numbers = #tpu.dot_dimension_numbers<[1], [0], [0], [1], [0, 0, 1, 1], [], []>} : vector<128x128xbf16>, vector<128x128xbf16>, vector<128x128xf32> -> vector<128x128xf32>
    %c0_16 = arith.constant 0 : index
    %c0_17 = arith.constant 0 : index
    %25 = vector.load %arg5[%c0_16, %c0_17] : memref<1x128xf32, #tpu.memory_space<vmem>>, vector<1x128xf32>
    %26 = vector.broadcast %25 : vector<1x128xf32> to vector<128x128xf32>
    %27 = arith.addf %24, %26 : vector<128x128xf32>
    %28 = arith.truncf %27 : vector<128x128xf32> to vector<128x128xbf16>
    %c0_18 = arith.constant 0 : index
    %c0_19 = arith.constant 0 : index
    %29 = vector.load %arg6[%c0_18, %c0_19] : memref<128x128xbf16, #tpu.memory_space<vmem>>, vector<128x128xbf16>
    tpu.vector_store %arg6[%c0_18, %c0_19], %28 {strides = array<i32>} : memref<128x128xbf16, #tpu.memory_space<vmem>>, vector<128x128xbf16>,
    return
  }
  func.func @transform_0(%arg0: i32) -> (i32, i32) {
    %c0_i32 = arith.constant 0 : i32
    %c0_i32_0 = arith.constant 0 : i32
    return %arg0, %c0_i32 : i32, i32
  }
  func.func @transform_1(%arg0: i32) -> (i32, i32, i32) {
    %c0_i32 = arith.constant 0 : i32
    %c0_i32_0 = arith.constant 0 : i32
    %c0_i32_1 = arith.constant 0 : i32
    %c0_i32_2 = arith.constant 0 : i32
    return %c0_i32, %c0_i32_0, %c0_i32_1 : i32, i32, i32
  }
  func.func @transform_2(%arg0: i32) -> (i32, i32) {
    %c0_i32 = arith.constant 0 : i32
    %c0_i32_0 = arith.constant 0 : i32
    %c0_i32_1 = arith.constant 0 : i32
    return %c0_i32, %c0_i32_0 : i32, i32
  }
  func.func @transform_3(%arg0: i32) -> (i32, i32) {
    %c0_i32 = arith.constant 0 : i32
    %c0_i32_0 = arith.constant 0 : i32
    %c0_i32_1 = arith.constant 0 : i32
    return %c0_i32, %c0_i32_0 : i32, i32
  }
  func.func @transform_4(%arg0: i32) -> (i32, i32) {
    %c0_i32 = arith.constant 0 : i32
    %c0_i32_0 = arith.constant 0 : i32
    %c0_i32_1 = arith.constant 0 : i32
    return %c0_i32, %c0_i32_0 : i32, i32
  }
  func.func @transform_5(%arg0: i32) -> (i32, i32) {
    %c0_i32 = arith.constant 0 : i32
    %c0_i32_0 = arith.constant 0 : i32
    return %arg0, %c0_i32 : i32, i32
  }
}

</mosaic_0001>

<bundles_post_ra>
// kernel: _forward.1
= control target key start
LH: loop header
LB: loop body
LE: loop exit
PB: predicated region body
PF: predicated region fallthrough
CT: control target
= control target key end

     0   :  { %s1400_s18 = smov 0   ;;  %s1538_s0 = inlined_call_operand.vmem [shape: f32[512,32], index: 0, kind: input, shape index: {}]   ;;  %s1539_s1 = inlined_call_operand.vmem [shape: bf16[2,128,128], index: 1, kind: input, shape index: {}]   ;;  %s1540_s2 = inlined_call_operand.vmem [shape: f32[2,128], index: 2, kind: input, shape index: {}]   ;;  %s1541_s3 = inlined_call_operand.vmem [shape: bf16[128,128], index: 3, kind: input, shape index: {}]   ;;  %s1542_s4 = inlined_call_operand.vmem [shape: f32[1,128], index: 4, kind: input, shape index: {}]   ;;  %s1543_s5 = inlined_call_operand.vmem [shape: bf16[512,128], index: 5, kind: output, shape index: {}]  }
   0x1 LB: > { %s995_s19 = sadd.s32 4294967295, %s1368_s18   ;;  %p999_p0 = scmp.ge.s32.totalorder %s1368_s18, 1  ;;  %s1368_s18 = sphi %s1400_s18, %s15_s18  }
   0x2   : > { %p188_p1 = scmp.lt.s32.totalorder %s1368_s18, 5 }
   0x4   : > { %p189_p2 = pnand %p999_p0, %p188_p1 }
   0x5   : > { %v1280_v0 = vld [vmem:[%s1539_s1] sm:$0xff] (!%p189_p2)   ;;  %s1000_s22 = sshll.u32 (!%p189_p2), %s995_s19, 4  ;;  %v1281_v1 = vld [vmem:[%s1539_s1 + $0x8] sm:$0xff] (!%p189_p2)   ;;  %vm274_vm0 = vcmask (!%p189_p2), 261120   ;;  %v1284_v28 = vld [vmem:[%s1539_s1 + $0x50] sm:$0xff] (!%p189_p2)  }
   0x6   : > { %192 = sbr.rel (%p189_p2) target bundleno = 733 (0x2dd), region = 40  ;;  %p217_p3 = scmp.lt.s32.totalorder (!%p189_p2), %s1000_s22, 63  ;;  %1188 = vmatprep.subr.bf16.mxu0 (!%p189_p2), %v1280_v0  ;;  %v1282_v26 = vld [vmem:[%s1539_s1 + $0x40] sm:$0xff] (!%p189_p2)   ;;  %v1283_v27 = vld [vmem:[%s1539_s1 + $0x48] sm:$0xff] (!%p189_p2)   ;;  %v1285_v29 = vld [vmem:[%s1539_s1 + $0x58] sm:$0xff] (!%p189_p2)  }
   0x7   : > { %1189 = vmatpush3.bf16.msra.mxu0 (!%p189_p2), %v1280_v0  ;;  %1208 = vmatprep.subr.bf16.mxu1 (!%p189_p2), %v1282_v26  ;;  %v1286_v30 = vld [vmem:[%s1539_s1 + $0x60] sm:$0xff] (!%p189_p2)   ;;  %v1287_v31 = vld [vmem:[%s1539_s1 + $0x68] sm:$0xff] (!%p189_p2)   ;;  %v1288_v32 = vld [vmem:[%s1539_s1 + $0x70] sm:$0xff] (!%p189_p2)  }
   0x8   : > { %1190 = vmatprep.subr.bf16.mxu0 (!%p189_p2), %v1281_v1  ;;  %1209 = vmatpush3.bf16.msra.mxu1 (!%p189_p2), %v1282_v26  ;;  %v1289_v33 = vld [vmem:[%s1539_s1 + $0x78] sm:$0xff] (!%p189_p2)   ;;  %v1290_v34 = vld [vmem:[%s1541_s3] sm:$0xff] (!%p189_p2)   ;;  %v1291_v35 = vld [vmem:[%s1541_s3 + $0x8] sm:$0xff] (!%p189_p2)  }
   0x9   : > { %1210 = vmatprep.subr.bf16.mxu1 (!%p189_p2), %v1283_v27  ;;  %v1292_v36 = vld [vmem:[%s1541_s3 + $0x10] sm:$0xff] (!%p189_p2)   ;;  %v1293_v37 = vld [vmem:[%s1541_s3 + $0x18] sm:$0xff] (!%p189_p2)   ;;  %v1294_v38 = vld [vmem:[%s1541_s3 + $0x20] sm:$0xff] (!%p189_p2)  }
   0xa   : > { %v1295_v39 = vld [vmem:[%s1541_s3 + $0x28] sm:$0xff] (!%p189_p2)   ;;  %v1491_v40 = vld [vmem:[%s1540_s2] ss:$0 sm:$0xff] (!%p189_p2) }
   0xb   : > { %1191 = vmatpush3.bf16.msra.mxu0 (!%p189_p2), %v1281_v1 }
   0xc   : > { %1211 = vmatpush3.bf16.msra.mxu1 (!%p189_p2), %v1283_v27  ;;  %1240 = vmatprep.subr.bf16.mxu0 (!%p189_p2), %v1290_v34 }
   0xd   : > { %s1545_s22 = smov (!%p217_p3, %s1000_s22), 63  ;;  %1212 = vmatprep.subr.bf16.mxu1 %v1284_v28 }
   0xe   : > { %s1001_s25 = sshll.u32 %s1545_s22, 3  ;;  %s1003_s20 = sshll.u32 %s1545_s22, 2 }
   0xf   : > { %s1420_s28 = scalar_lea.vmem %s1538_s0, %s1001_s25  ;;  %s1525_s24 = scalar_lea.vmem %s1543_s5, %s1003_s20 }
  0x10   : > { %v229_v2 = vld [vmem:[%s1420_s28] sm:$0xff]  ;;  %v230_v3 = vld [vmem:[%s1420_s28 + $0x8] sm:$0xff]  ;;  %v231_v4 = vld [vmem:[%s1420_s28 + $0x10] sm:$0xff]  ;;  %1213 = vmatpush3.bf16.msra.mxu1 %v1284_v28 }
  0x11   : > { %v245_v5 = vpack.c.bf16 %v230_v3, %v229_v2  ;;  %v232_v6 = vld [vmem:[%s1420_s28 + $0x18] sm:$0xff]  ;;  %v233_v7 = vld [vmem:[%s1420_s28 + $0x20] sm:$0xff]  ;;  %v234_v8 = vld [vmem:[%s1420_s28 + $0x28] sm:$0xff]  ;;  %1214 = vmatprep.subr.bf16.mxu1 %v1285_v29 }
  0x12   : > { %v246_v9 = vpack.c.bf16 %v232_v6, %v231_v4  ;;  %v247_v10 = vpack.c.bf16 %v234_v8, %v233_v7  ;;  %v235_v11 = vld [vmem:[%s1420_s28 + $0x30] sm:$0xff]  ;;  %v236_v12 = vld [vmem:[%s1420_s28 + $0x38] sm:$0xff]  ;;  %v237_v13 = vld [vmem:[%s1420_s28 + $0x40] sm:$0xff] }
  0x13   : > { %1192 = vmatprep.mubr.msk.bf16.mxu0 %vm274_vm0, %v245_v5  ;;  %v238_v14 = vld [vmem:[%s1420_s28 + $0x48] sm:$0xff]  ;;  %v248_v15 = vpack.c.bf16 %v236_v12, %v235_v11  ;;  %v239_v17 = vld [vmem:[%s1420_s28 + $0x50] sm:$0xff]  ;;  %v240_v18 = vld [vmem:[%s1420_s28 + $0x58] sm:$0xff] }
  0x14   : > { %1193 = vmatmul.mubr.msk.bf16.vlgmr.msra.gmra.mrb[0].mxu0 %vm274_vm0, %v246_v9  ;;  %v249_v16 = vpack.c.bf16 %v238_v14, %v237_v13  ;;  %v241_v19 = vld [vmem:[%s1420_s28 + $0x60] sm:$0xff]  ;;  %v242_v20 = vld [vmem:[%s1420_s28 + $0x68] sm:$0xff]  ;;  %v250_v21 = vpack.c.bf16 %v240_v18, %v239_v17  ;;  %v243_v23 = vld [vmem:[%s1420_s28 + $0x70] sm:$0xff]  ;;  %1215 = vmatpush3.bf16.msra.mxu1 %v1285_v29 }
  0x15   : > { %1196 = vmatprep.mubr.msk.bf16.mxu0 %vm274_vm0, %v247_v10  ;;  %v251_v22 = vpack.c.bf16 %v242_v20, %v241_v19  ;;  %v244_v24 = vld [vmem:[%s1420_s28 + $0x78] sm:$0xff]  ;;  %1216 = vmatprep.subr.bf16.mxu1 %v1286_v30 }
  0x16   : > { %v252_v25 = vpack.c.bf16 %v244_v24, %v243_v23  ;;  %1241 = vmatpush3.bf16.msra.mxu0 %v1290_v34 }
  0x17   : > { %1242 = vmatprep.subr.bf16.mxu0 %v1291_v35 }
  0x18   : > { %1217 = vmatpush3.bf16.msra.mxu1 %v1286_v30 }
  0x19   : > { %1218 = vmatprep.subr.bf16.mxu1 %v1287_v31 }
  0x1a   : > { %1243 = vmatpush3.bf16.msra.mxu0 %v1291_v35 }
  0x1b   : > { %1244 = vmatprep.subr.bf16.mxu0 %v1292_v36 }
  0x1c   : > { %1197 = vmatmul.mubr.msk.bf16.gmra.mrb[4].mxu0 %vm274_vm0, %v248_v15  ;;  %1219 = vmatpush3.bf16.msra.mxu1 %v1287_v31 }
  0x1d   : > { %1200 = vmatprep.mubr.msk.bf16.mxu0 %vm274_vm0, %v249_v16  ;;  %1220 = vmatprep.subr.bf16.mxu1 %v1288_v32 }
  0x1e   : > { %1245 = vmatpush3.bf16.msra.mxu0 %v1292_v36 }
  0x1f   : > { %1246 = vmatprep.subr.bf16.mxu0 %v1293_v37 }
  0x20   : > { %1221 = vmatpush3.bf16.msra.mxu1 %v1288_v32 }
  0x21   : > { %1222 = vmatprep.subr.bf16.mxu1 %v1289_v33 }
  0x22   : > { %1247 = vmatpush3.bf16.msra.mxu0 %v1293_v37 }
  0x23   : > { %1248 = vmatprep.subr.bf16.mxu0 %v1294_v38 }
  0x24   : > { %1201 = vmatmul.mubr.msk.bf16.gmra.mrb[8].mxu0 %vm274_vm0, %v250_v21  ;;  %1223 = vmatpush3.bf16.msra.mxu1 %v1289_v33 }
  0x25   : > { %1204 = vmatprep.mubr.msk.bf16.mxu0 %vm274_vm0, %v251_v22 }
  0x26   : > { %1249 = vmatpush3.bf16.msra.mxu0 %v1294_v38 }
  0x27   : > { %1250 = vmatprep.subr.bf16.mxu0 %v1295_v39 }
  0x2a   : > { %1251 = vmatpush3.bf16.msra.mxu0 %v1295_v39 }
  0x2c   : > { %1205 = vmatmul.mubr.msk.bf16.gmra.mrb[12].mxu0 %vm274_vm0, %v252_v25 }
  0xe7   : > { %v1194_v41 = vpop.f32.mrb[0].mxu0 }
  0xe8   : > { %v342_v42 = vadd.f32 %v1194_v41, %v1491_v40  ;;  %v333_v43 = vpop.f32.mrb[1].mxu0 }
  0xe9   : > { %v334_v44 = vadd.f32 %v1491_v40, %v333_v43  ;;  %v1195_v45 = vpop.f32.mrb[2].mxu0 }
  0xea   : > { %v1017_v46 = vmul.f32 -1.442695, %v342_v42  ;;  %v345_v47 = vadd.f32 %v1195_v45, %v1491_v40  ;;  %v336_v48 = vpop.f32.mrb[3].mxu0 }
  0xeb   : > { %v1015_v49 = vmul.f32 -1.442695, %v334_v44  ;;  %v337_v50 = vadd.f32 %v1491_v40, %v336_v48 }
  0xec   : > { %1298 = vpow2.f32 %v1017_v46  ;;  %v1018_v51 = vmul.f32 -1.442695, %v345_v47 }
  0xed   : > { %1300 = vpow2.f32 %v1015_v49  ;;  %v1016_v52 = vmul.f32 -1.442695, %v337_v50 }
  0xee   : > { %1302 = vpow2.f32 %v1018_v51 }
  0xef   : > { %1304 = vpow2.f32 %v1016_v52  ;;  %v1198_v53 = vpop.f32.mrb[4].mxu0 }
  0xf0   : > { %v358_v54 = vadd.f32 %v1198_v53, %v1491_v40  ;;  %v349_v55 = vpop.f32.mrb[5].mxu0 }
  0xf1   : > { %v350_v56 = vadd.f32 %v1491_v40, %v349_v55  ;;  %v1199_v57 = vpop.f32.mrb[6].mxu0 }
  0xf2   : > { %v1021_v58 = vmul.f32 -1.442695, %v358_v54  ;;  %v361_v59 = vadd.f32 %v1199_v57, %v1491_v40  ;;  %v352_v60 = vpop.f32.mrb[7].mxu0 }
  0xf3   : > { %v1019_v61 = vmul.f32 -1.442695, %v350_v56  ;;  %v353_v62 = vadd.f32 %v1491_v40, %v352_v60 }
  0xf4   : > { %1306 = vpow2.f32 %v1021_v58  ;;  %v1022_v63 = vmul.f32 -1.442695, %v361_v59 }
  0xf5   : > { %1308 = vpow2.f32 %v1019_v61  ;;  %v1020_v0 = vmul.f32 -1.442695, %v353_v62 }
  0xf6   : > { %v1299_v1 = vpop.eup %1298  ;;  %1310 = vpow2.f32 %v1022_v63 }
  0xf7   : > { %v1301_v2 = vpop.eup %1300  ;;  %v446_v3 = vadd.f32 1.0, %v1299_v1  ;;  %1312 = vpow2.f32 %v1020_v0  ;;  %v1202_v4 = vpop.f32.mrb[8].mxu0 }
  0xf8   : > { %v1303_v5 = vpop.eup %1302  ;;  %v444_v6 = vadd.f32 1.0, %v1301_v2  ;;  %v374_v7 = vadd.f32 %v1202_v4, %v1491_v40  ;;  %v365_v8 = vpop.f32.mrb[9].mxu0 }
  0xf9   : > { %v1305_v9 = vpop.eup %1304  ;;  %1314 = vrcp.f32 %v446_v3  ;;  %v447_v10 = vadd.f32 1.0, %v1303_v5  ;;  %v366_v11 = vadd.f32 %v1491_v40, %v365_v8  ;;  %v1203_v12 = vpop.f32.mrb[10].mxu0 }
  0xfa   : > { %1316 = vrcp.f32 %v444_v6  ;;  %v445_v13 = vadd.f32 1.0, %v1305_v9  ;;  %v1025_v14 = vmul.f32 -1.442695, %v374_v7  ;;  %v377_v15 = vadd.f32 %v1203_v12, %v1491_v40  ;;  %v368_v16 = vpop.f32.mrb[11].mxu0 }
  0xfb   : > { %1318 = vrcp.f32 %v447_v10  ;;  %v1023_v17 = vmul.f32 -1.442695, %v366_v11  ;;  %v369_v18 = vadd.f32 %v1491_v40, %v368_v16 }
  0xfc   : > { %1320 = vrcp.f32 %v445_v13  ;;  %v1026_v19 = vmul.f32 -1.442695, %v377_v15 }
  0xfd   : > { %1322 = vpow2.f32 %v1025_v14  ;;  %v1024_v20 = vmul.f32 -1.442695, %v369_v18  ;;  %v1297_v18 = vld [vmem:[%s1541_s3 + $0x38] sm:$0xff]  }
  0xfe   : > { %v1307_v21 = vpop.eup %1306  ;;  %1324 = vpow2.f32 %v1023_v17  ;;  %v1296_v17 = vld [vmem:[%s1541_s3 + $0x30] sm:$0xff]  }
  0xff   : > { %v1309_v22 = vpop.eup %1308  ;;  %v450_v23 = vadd.f32 1.0, %v1307_v21  ;;  %1326 = vpow2.f32 %v1026_v19  ;;  %v1206_v24 = vpop.f32.mrb[12].mxu0  ;;  %1252 = vmatprep.subr.bf16.mxu0 %v1296_v17  ;;  %v1047_v19 = vld [vmem:[%s1540_s2 + $0x1] ss:$0 sm:$0xff] }
 0x100   : > { %v1311_v25 = vpop.eup %1310  ;;  %v448_v26 = vadd.f32 1.0, %v1309_v22  ;;  %1328 = vpow2.f32 %v1024_v20  ;;  %v390_v27 = vadd.f32 %v1206_v24, %v1491_v40  ;;  %v381_v28 = vpop.f32.mrb[13].mxu0  ;;  %1253 = vmatpush3.bf16.msra.mxu0 %v1296_v17 }
 0x101   : > { %v1313_v29 = vpop.eup %1312  ;;  %1330 = vrcp.f32 %v450_v23  ;;  %v451_v30 = vadd.f32 1.0, %v1311_v25  ;;  %v382_v31 = vadd.f32 %v1491_v40, %v381_v28  ;;  %v1207_v32 = vpop.f32.mrb[14].mxu0  ;;  %1254 = vmatprep.subr.bf16.mxu0 %v1297_v18 }
 0x102   : > { %1332 = vrcp.f32 %v448_v26  ;;  %v449_v33 = vadd.f32 1.0, %v1313_v29  ;;  %v1029_v34 = vmul.f32 -1.442695, %v390_v27  ;;  %v393_v35 = vadd.f32 %v1207_v32, %v1491_v40  ;;  %v384_v36 = vpop.f32.mrb[15].mxu0 }
 0x103   : > { %v1315_v37 = vpop.eup %1314  ;;  %1334 = vrcp.f32 %v451_v30  ;;  %v1027_v38 = vmul.f32 -1.442695, %v382_v31  ;;  %v385_v39 = vadd.f32 %v1491_v40, %v384_v36 }
 0x104   : > { %v1317_v41 = vpop.eup %1316  ;;  %1336 = vrcp.f32 %v449_v33  ;;  %v1030_v42 = vmul.f32 -1.442695, %v393_v35  ;;  %1255 = vmatpush3.bf16.msra.mxu0 %v1297_v18 }
 0x105   : > { %v1319_v43 = vpop.eup %1318  ;;  %1338 = vpow2.f32 %v1029_v34  ;;  %v1028_v44 = vmul.f32 -1.442695, %v385_v39 }
 0x106   : > { %v1321_v45 = vpop.eup %1320  ;;  %1340 = vpow2.f32 %v1027_v38  ;;  %v493_v46 = vpack.c.bf16 %v1319_v43, %v1315_v37 }
 0x107   : > { %v1323_v47 = vpop.eup %1322  ;;  %1342 = vpow2.f32 %v1030_v42  ;;  %v492_v48 = vpack.c.bf16 %v1321_v45, %v1317_v41 }
 0x108   : > { %v1325_v49 = vpop.eup %1324  ;;  %v454_v50 = vadd.f32 1.0, %v1323_v47  ;;  %1344 = vpow2.f32 %v1028_v44 }
 0x109   : > { %v1327_v51 = vpop.eup %1326  ;;  %v452_v52 = vadd.f32 1.0, %v1325_v49  ;;  %1224 = vmatprep.mubr.bf16.mxu1 %v492_v48 }
 0x10a   : > { %v1329_v53 = vpop.eup %1328  ;;  %1346 = vrcp.f32 %v454_v50  ;;  %v455_v40 = vadd.f32 1.0, %v1327_v51  ;;  %1225 = vmatmul.mubr.bf16.vlgmr.msra.gmra.mrb[0].mxu1 %v493_v46 }
 0x10b   : > { %v1331_v54 = vpop.eup %1330  ;;  %1348 = vrcp.f32 %v452_v52  ;;  %v453_v55 = vadd.f32 1.0, %v1329_v53 }
 0x10c   : > { %v1333_v56 = vpop.eup %1332  ;;  %1350 = vrcp.f32 %v455_v40 }
 0x10d   : > { %v1335_v57 = vpop.eup %1334  ;;  %1352 = vrcp.f32 %v453_v55 }
 0x10e   : > { %v1337_v58 = vpop.eup %1336  ;;  %v495_v59 = vpack.c.bf16 %v1335_v57, %v1331_v54 }
 0x10f   : > { %v1339_v60 = vpop.eup %1338  ;;  %v494_v61 = vpack.c.bf16 %v1337_v58, %v1333_v56 }
 0x110   : > { %v1341_v62 = vpop.eup %1340  ;;  %v458_v63 = vadd.f32 1.0, %v1339_v60 }
 0x111   : > { %v1343_v0 = vpop.eup %1342  ;;  %v456_v1 = vadd.f32 1.0, %v1341_v62  ;;  %1228 = vmatprep.mubr.bf16.mxu1 %v494_v61 }
 0x112   : > { %v1345_v2 = vpop.eup %1344  ;;  %1354 = vrcp.f32 %v458_v63  ;;  %v459_v3 = vadd.f32 1.0, %v1343_v0  ;;  %1229 = vmatmul.mubr.bf16.gmra.mrb[4].mxu1 %v495_v59 }
 0x113   : > { %1356 = vrcp.f32 %v456_v1  ;;  %v457_v4 = vadd.f32 1.0, %v1345_v2 }
 0x114   : > { %v1347_v5 = vpop.eup %1346  ;;  %1358 = vrcp.f32 %v459_v3 }
 0x115   : > { %v1349_v6 = vpop.eup %1348  ;;  %1360 = vrcp.f32 %v457_v4 }
 0x116   : > { %v1351_v7 = vpop.eup %1350 }
 0x117   : > { %v1353_v8 = vpop.eup %1352  ;;  %v497_v9 = vpack.c.bf16 %v1351_v7, %v1347_v5 }
 0x118   : > { %v496_v10 = vpack.c.bf16 %v1353_v8, %v1349_v6 }
 0x11a   : > { %1232 = vmatprep.mubr.bf16.mxu1 %v496_v10 }
 0x11b   : > { %1233 = vmatmul.mubr.bf16.gmra.mrb[8].mxu1 %v497_v9 }
 0x11c   : > { %v1355_v11 = vpop.eup %1354 }
 0x11d   : > { %v1357_v12 = vpop.eup %1356 }
 0x11e   : > { %v1359_v13 = vpop.eup %1358 }
 0x11f   : > { %v1361_v14 = vpop.eup %1360  ;;  %v499_v15 = vpack.c.bf16 %v1359_v13, %v1355_v11  ;;  %v1056_v13 = vld [vmem:[%s1542_s4] ss:$0 sm:$0xff] }
 0x120   : > { %v498_v16 = vpack.c.bf16 %v1361_v14, %v1357_v12 }
 0x122   : > { %1236 = vmatprep.mubr.bf16.mxu1 %v498_v16 }
 0x123   : > { %1237 = vmatmul.mubr.bf16.gmra.mrb[12].mxu1 %v499_v15 }
 0x1dd   : > { %v1226_v20 = vpop.f32.mrb[0].mxu1 }
 0x1de   : > { %v613_v21 = vadd.f32 %v1226_v20, %v1047_v19  ;;  %v604_v22 = vpop.f32.mrb[1].mxu1 }
 0x1df   : > { %v605_v23 = vadd.f32 %v1047_v19, %v604_v22  ;;  %v1227_v24 = vpop.f32.mrb[2].mxu1 }
 0x1e0   : > { %v616_v25 = vadd.f32 %v1227_v24, %v1047_v19  ;;  %v607_v26 = vpop.f32.mrb[3].mxu1  ;;  %v669_v28 = vmax.f32 %v613_v21, 0.0 }
 0x1e1   : > { %v608_v27 = vadd.f32 %v1047_v19, %v607_v26  ;;  %v667_v30 = vmax.f32 %v605_v23, 0.0 }
 0x1e2   : > { %v670_v29 = vmax.f32 %v616_v25, 0.0 }
 0x1e3   : > { %v668_v31 = vmax.f32 %v608_v27, 0.0 }
 0x1e4   : > { %v684_v32 = vpack.c.bf16 %v670_v29, %v669_v28 }
 0x1e5   : > { %v683_v33 = vpack.c.bf16 %v668_v31, %v667_v30  ;;  %v1230_v34 = vpop.f32.mrb[4].mxu1 }
 0x1e6   : > { %v629_v35 = vadd.f32 %v1230_v34, %v1047_v19  ;;  %v620_v36 = vpop.f32.mrb[5].mxu1 }
 0x1e7   : > { %v621_v37 = vadd.f32 %v1047_v19, %v620_v36  ;;  %v1231_v38 = vpop.f32.mrb[6].mxu1  ;;  %1256 = vmatprep.mubr.bf16.mxu0 %v683_v33 }
 0x1e8   : > { %v632_v39 = vadd.f32 %v1231_v38, %v1047_v19  ;;  %v623_v41 = vpop.f32.mrb[7].mxu1  ;;  %1257 = vmatmul.mubr.bf16.vlgmr.msra.gmra.mrb[16].mxu0 %v684_v32  ;;  %v673_v43 = vmax.f32 %v629_v35, 0.0 }
 0x1e9   : > { %v624_v42 = vadd.f32 %v1047_v19, %v623_v41  ;;  %v671_v45 = vmax.f32 %v621_v37, 0.0 }
 0x1ea   : > { %v674_v44 = vmax.f32 %v632_v39, 0.0 }
 0x1eb   : > { %v672_v46 = vmax.f32 %v624_v42, 0.0 }
 0x1ec   : > { %v686_v47 = vpack.c.bf16 %v674_v44, %v673_v43 }
 0x1ed   : > { %v685_v48 = vpack.c.bf16 %v672_v46, %v671_v45 }
 0x1ee   : > { %v1234_v49 = vpop.f32.mrb[8].mxu1 }
 0x1ef   : > { %v645_v50 = vadd.f32 %v1234_v49, %v1047_v19  ;;  %v636_v51 = vpop.f32.mrb[9].mxu1  ;;  %1260 = vmatprep.mubr.bf16.mxu0 %v685_v48 }
 0x1f0   : > { %v637_v52 = vadd.f32 %v1047_v19, %v636_v51  ;;  %v1235_v53 = vpop.f32.mrb[10].mxu1  ;;  %1261 = vmatmul.mubr.bf16.gmra.mrb[20].mxu0 %v686_v47 }
 0x1f1   : > { %v648_v40 = vadd.f32 %v1235_v53, %v1047_v19  ;;  %v639_v54 = vpop.f32.mrb[11].mxu1  ;;  %v677_v56 = vmax.f32 %v645_v50, 0.0 }
 0x1f2   : > { %v640_v55 = vadd.f32 %v1047_v19, %v639_v54  ;;  %v675_v58 = vmax.f32 %v637_v52, 0.0 }
 0x1f3   : > { %v678_v57 = vmax.f32 %v648_v40, 0.0 }
 0x1f4   : > { %v676_v59 = vmax.f32 %v640_v55, 0.0 }
 0x1f5   : > { %v688_v60 = vpack.c.bf16 %v678_v57, %v677_v56 }
 0x1f6   : > { %v687_v61 = vpack.c.bf16 %v676_v59, %v675_v58  ;;  %v1238_v62 = vpop.f32.mrb[12].mxu1 }
 0x1f7   : > { %v661_v63 = vadd.f32 %v1238_v62, %v1047_v19  ;;  %v652_v0 = vpop.f32.mrb[13].mxu1 }
 0x1f8   : > { %v653_v1 = vadd.f32 %v1047_v19, %v652_v0  ;;  %v1239_v2 = vpop.f32.mrb[14].mxu1  ;;  %1264 = vmatprep.mubr.bf16.mxu0 %v687_v61 }
 0x1f9   : > { %v664_v3 = vadd.f32 %v1239_v2, %v1047_v19  ;;  %v655_v4 = vpop.f32.mrb[15].mxu1  ;;  %1265 = vmatmul.mubr.bf16.gmra.mrb[24].mxu0 %v688_v60  ;;  %v681_v6 = vmax.f32 %v661_v63, 0.0 }
 0x1fa   : > { %v656_v5 = vadd.f32 %v1047_v19, %v655_v4  ;;  %v679_v8 = vmax.f32 %v653_v1, 0.0 }
 0x1fb   : > { %v682_v7 = vmax.f32 %v664_v3, 0.0 }
 0x1fc   : > { %v680_v9 = vmax.f32 %v656_v5, 0.0 }
 0x1fd   : > { %v690_v10 = vpack.c.bf16 %v682_v7, %v681_v6 }
 0x1fe   : > { %v689_v11 = vpack.c.bf16 %v680_v9, %v679_v8 }
 0x200   : > { %1268 = vmatprep.mubr.bf16.mxu0 %v689_v11 }
 0x201   : > { %1269 = vmatmul.mubr.bf16.gmra.mrb[28].mxu0 %v690_v10 }
 0x2bb   : > { %v1258_v12 = vpop.f32.mrb[16].mxu0 }
 0x2bc   : > { %v796_v14 = vpop.f32.mrb[17].mxu0  ;;  %v805_v16 = vadd.f32 %v1258_v12, %v1056_v13 }
 0x2bd   : > { %v1259_v15 = vpop.f32.mrb[18].mxu0  ;;  %v797_v19 = vadd.f32 %v1056_v13, %v796_v14 }
 0x2be   : > { %v808_v17 = vadd.f32 %v1259_v15, %v1056_v13  ;;  %v799_v18 = vpop.f32.mrb[19].mxu0 }
 0x2bf   : > { %v800_v20 = vadd.f32 %v1056_v13, %v799_v18 }
 0x2c0   : > { %v1107_v21 = vpack.c.bf16 %v808_v17, %v805_v16 }
 0x2c1   : > { %v1102_v22 = vpack.c.bf16 %v800_v20, %v797_v19 }
 0x2c2   : > { %1139 = vst [vmem:[%s1525_s24 + $0x8] sm:$0xff] %v1107_v21  }
 0x2c3   : > { %1103 = vst [vmem:[%s1525_s24] sm:$0xff] %v1102_v22   ;;  %v1262_v23 = vpop.f32.mrb[20].mxu0 }
 0x2c4   : > { %v812_v24 = vpop.f32.mrb[21].mxu0  ;;  %v821_v26 = vadd.f32 %v1262_v23, %v1056_v13 }
 0x2c5   : > { %v1263_v25 = vpop.f32.mrb[22].mxu0  ;;  %v813_v29 = vadd.f32 %v1056_v13, %v812_v24 }
 0x2c6   : > { %v824_v27 = vadd.f32 %v1263_v25, %v1056_v13  ;;  %v815_v28 = vpop.f32.mrb[23].mxu0 }
 0x2c7   : > { %v816_v30 = vadd.f32 %v1056_v13, %v815_v28 }
 0x2c8   : > { %v1117_v31 = vpack.c.bf16 %v824_v27, %v821_v26 }
 0x2c9   : > { %v1112_v32 = vpack.c.bf16 %v816_v30, %v813_v29 }
 0x2ca   : > { %1141 = vst [vmem:[%s1525_s24 + $0x18] sm:$0xff] %v1117_v31  }
 0x2cb   : > { %1140 = vst [vmem:[%s1525_s24 + $0x10] sm:$0xff] %v1112_v32  }
 0x2cc   : > { %v1266_v33 = vpop.f32.mrb[24].mxu0 }
 0x2cd   : > { %v828_v34 = vpop.f32.mrb[25].mxu0  ;;  %v837_v36 = vadd.f32 %v1266_v33, %v1056_v13 }
 0x2ce   : > { %v1267_v35 = vpop.f32.mrb[26].mxu0  ;;  %v829_v39 = vadd.f32 %v1056_v13, %v828_v34 }
 0x2cf   : > { %v840_v37 = vadd.f32 %v1267_v35, %v1056_v13  ;;  %v831_v38 = vpop.f32.mrb[27].mxu0 }
 0x2d0   : > { %v832_v41 = vadd.f32 %v1056_v13, %v831_v38 }
 0x2d1   : > { %v1127_v42 = vpack.c.bf16 %v840_v37, %v837_v36 }
 0x2d2   : > { %v1122_v43 = vpack.c.bf16 %v832_v41, %v829_v39 }
 0x2d3   : > { %1143 = vst [vmem:[%s1525_s24 + $0x28] sm:$0xff] %v1127_v42  }
 0x2d4   : > { %1142 = vst [vmem:[%s1525_s24 + $0x20] sm:$0xff] %v1122_v43   ;;  %v1270_v44 = vpop.f32.mrb[28].mxu0 }
 0x2d5   : > { %v844_v45 = vpop.f32.mrb[29].mxu0  ;;  %v853_v47 = vadd.f32 %v1270_v44, %v1056_v13 }
 0x2d6   : > { %v1271_v46 = vpop.f32.mrb[30].mxu0  ;;  %v845_v50 = vadd.f32 %v1056_v13, %v844_v45 }
 0x2d7   : > { %v856_v48 = vadd.f32 %v1271_v46, %v1056_v13  ;;  %v847_v49 = vpop.f32.mrb[31].mxu0 }
 0x2d8   : > { %v848_v51 = vadd.f32 %v1056_v13, %v847_v49 }
 0x2d9   : > { %v1137_v52 = vpack.c.bf16 %v856_v48, %v853_v47 }
 0x2da   : > { %v1132_v53 = vpack.c.bf16 %v848_v51, %v845_v50 }
 0x2db   : > { %1145 = vst [vmem:[%s1525_s24 + $0x38] sm:$0xff] %v1137_v52  }
 0x2dc   : > { %1144 = vst [vmem:[%s1525_s24 + $0x30] sm:$0xff] %v1132_v53  }
 0x2dd PF: > { %s15_s18 = sadd.s32 1, %s1368_s18  }
 0x2de   : > { %p12_p4 = scmp.ge.s32.totalorder %s15_s18, 6  }
 0x2e0   :  { %14 = sbr.rel (!%p12_p4) target bundleno = 1 (0x1), region = 71 }

</bundles_post_ra>
